<compile_context>
chip_gen: v7x
topology: tpu7x:2x2x1
jax: 0.10.0
libtpu: 0.0.40
codegen_flags: <defaults>
</compile_context>

<pallas_src>
import functools as ft
import re

import jax
import jax.numpy as jnp
from jax import lax
from jax.experimental import pallas as pl
from jax.experimental.pallas import tpu as pltpu


def _round_up(x, m):
    return ((x + m - 1) // m) * m


def _cdiv(a, b):
    return (a + b - 1) // b


def _vmem_capacity_bytes():
    try:
        return int(pltpu.get_tpu_info().vmem_capacity_bytes)
    except Exception:
        return 64 << 20  # conservative fallback (v7x per-TC physical VMEM)


def _choose_tm(budget_bytes, per_row_bytes, fixed_bytes, M):
    """Largest row tile (multiple of 16 for bf16 sublane packing) fitting VMEM."""
    avail = budget_bytes - fixed_bytes
    if avail < per_row_bytes * 16:
        tm = 16
    else:
        tm = (avail // per_row_bytes) // 16 * 16
    tm = int(min(tm, 1024))
    tm = min(tm, max(16, _round_up(M, 16)))
    return max(16, tm)


# ----------------------------- Pallas kernels -----------------------------
def _embed_kernel(occ_ref, w_ref, out_ref, *, compute_dtype, precision):
    # occ_ref: (tm, L) input dtype; w_ref: (L, E) compute dtype (resident);
    # out_ref: (tm, E) f32.  Occs are cast to bf16 in-kernel (VPU, cheap) so
    # the MXU runs native bf16 passes while HBM streams the f32 occs once.
    a = occ_ref[...].astype(compute_dtype)
    out_ref[...] = jnp.dot(
        a, w_ref[...], precision=precision, preferred_element_type=jnp.float32
    ).astype(out_ref.dtype)


def _embed_kernel_ktiled(occ_ref, w_ref, out_ref, acc_ref, *, l_total, l_block,
                         compute_dtype, precision):
    # K(L)-tiled reduction with an f32 VMEM accumulator.  The ragged last K
    # block is masked in-kernel (both operands) so no HBM padding is needed.
    k = pl.program_id(1)

    @pl.when(k == 0)
    def _():
        acc_ref[...] = jnp.zeros_like(acc_ref)

    rem = l_total - k * l_block  # number of valid K entries in this block
    a = occ_ref[...]
    w = w_ref[...]
    col = lax.broadcasted_iota(jnp.int32, a.shape, dimension=1)
    a = jnp.where(col < rem, a, jnp.zeros_like(a)).astype(compute_dtype)
    row = lax.broadcasted_iota(jnp.int32, w.shape, dimension=0)
    w = jnp.where(row < rem, w, jnp.zeros_like(w))

    acc_ref[...] += jnp.dot(a, w, precision=precision,
                            preferred_element_type=jnp.float32)

    @pl.when(k == pl.num_programs(1) - 1)
    def _():
        out_ref[...] = acc_ref[...].astype(out_ref.dtype)


# ------------------------------- dispatcher --------------------------------
def occupation_spin_embedding(occs_flat, weight_t, *, compute_dtype=jnp.bfloat16,
                              max_l_block=2048, force_pallas=False):
    """occs_flat: (M, L); weight_t: (L, E) pre-transposed.  Returns (M, E) f32."""
    M, L = occs_flat.shape
    L2, E = weight_t.shape
    assert L == L2
    compute_dtype = jnp.dtype(compute_dtype)
    if weight_t.dtype != compute_dtype:
        weight_t = weight_t.astype(compute_dtype)
    precision = (lax.Precision.HIGHEST if compute_dtype == jnp.dtype(jnp.float32)
                 else lax.Precision.DEFAULT)

    # Tiny problems: launch + lane-padding overhead dominates; let XLA fuse it.
    if not force_pallas and (M * L * E) <= (1 << 20):
        out = jnp.dot(occs_flat.astype(compute_dtype), weight_t,
                      precision=precision, preferred_element_type=jnp.float32)
        return out.astype(jnp.float32)

    # Generation-aware VMEM budget (v5e/v6e: 128 MiB physical, v7x: 64 MiB).
    cap = _vmem_capacity_bytes()
    vmem_limit = max(32 << 20, min(int(cap * 0.7), 64 << 20))
    budget = vmem_limit - (4 << 20)  # headroom for Mosaic internal scratch

    occ_isz = occs_flat.dtype.itemsize
    w_isz = weight_t.dtype.itemsize
    use_ktile = L > max_l_block

    if not use_ktile:
        # Weight fully resident in VMEM (constant block index): streamed from
        # HBM once, not once per row tile.  1-D grid over M rows.
        fixed = 2 * L * E * w_isz                        # double-buffered weight
        per_row = 2 * L * occ_isz + 2 * E * 4            # occ block + f32 out block
        tm = _choose_tm(budget, per_row, fixed, M)
        grid_m = _cdiv(M, tm)
        if grid_m == 1 and M >= 32:                      # feed both v7x TensorCores
            tm = max(16, _round_up(_cdiv(M, 2), 16))
            grid_m = _cdiv(M, tm)

        kernel = ft.partial(_embed_kernel, compute_dtype=compute_dtype,
                            precision=precision)
        return pl.pallas_call(
            kernel,
            out_shape=jax.ShapeDtypeStruct((M, E), jnp.float32),
            grid_spec=pltpu.PrefetchScalarGridSpec(
                num_scalar_prefetch=0,
                grid=(grid_m,),
                in_specs=[
                    pl.BlockSpec((tm, L), lambda i: (i, 0)),   # full-L block: no pad
                    pl.BlockSpec((L, E), lambda i: (0, 0)),    # resident weight
                ],
                out_specs=pl.BlockSpec((tm, E), lambda i: (i, 0)),
            ),
            compiler_params=pltpu.CompilerParams(
                dimension_semantics=("parallel",),
                vmem_limit_bytes=int(vmem_limit),
            ),
        )(occs_flat, weight_t)

    # Large L: K-tiled reduction so VMEM stays bounded independently of L.
    tk = min(_round_up(max_l_block, 128), _round_up(L, 128))
    fixed = 2 * tk * E * w_isz
    per_row = 2 * tk * occ_isz + 2 * E * 4 + E * 4       # occ + out + acc scratch
    tm = _choose_tm(budget, per_row, fixed, M)
    grid_m = _cdiv(M, tm)
    if grid_m == 1 and M >= 32:
        tm = max(16, _round_up(_cdiv(M, 2), 16))
        grid_m = _cdiv(M, tm)
    grid_k = _cdiv(L, tk)

    kernel = ft.partial(_embed_kernel_ktiled, l_total=L, l_block=tk,
                        compute_dtype=compute_dtype, precision=precision)
    return pl.pallas_call(
        kernel,
        out_shape=jax.ShapeDtypeStruct((M, E), jnp.float32),
        grid_spec=pltpu.PrefetchScalarGridSpec(
            num_scalar_prefetch=0,
            grid=(grid_m, grid_k),
            in_specs=[
                pl.BlockSpec((tm, tk), lambda i, k: (i, k)),
                pl.BlockSpec((tk, E), lambda i, k: (k, 0)),
            ],
            out_specs=pl.BlockSpec((tm, E), lambda i, k: (i, 0)),
            scratch_shapes=[pltpu.VMEM((tm, E), jnp.float32)],
        ),
        compiler_params=pltpu.CompilerParams(
            dimension_semantics=("parallel", "arbitrary"),
            vmem_limit_bytes=int(vmem_limit),
        ),
    )(occs_flat, weight_t)


# ----------------------------- JAX-side module ----------------------------
_EINOPS_REGEX = re.compile(r"\((.*)\)")


class OccupationSpinEmbedding:
    """JAX/Pallas port of the PyTorch OccupationSpinEmbedding module."""

    def __init__(self, input_token_dims, output_token_dims, einops_pattern, key,
                 compute_dtype=jnp.bfloat16):
        self.ldims = ft.reduce(lambda x, y: x * y, input_token_dims)
        self.einops_pattern = einops_pattern
        self.compute_dtype = jnp.dtype(compute_dtype)
        # master parameter (analog of torch.randn(E, L)), kept in f32
        self.occs_to_logits = jax.random.normal(
            key, (output_token_dims, self.ldims), dtype=jnp.float32
        )
        # Pre-transpose ONCE to (L, E) and pre-cast ONCE to the compute dtype:
        # the kernel never transposes, and the MXU runs native bf16 passes.
        self.weight_t = jnp.asarray(self.occs_to_logits.T, dtype=self.compute_dtype)

    def _rearrange(self, occupations):
        """'s b <in> -> s b (<out>)' for name-permutation patterns (plain JAX glue)."""
        inp, out = self.einops_pattern.split("->")
        inp = inp.strip()
        out = out.strip()
        m = _EINOPS_REGEX.match(out)
        assert m, "Output einops pattern must be of the form (o1', ..., on')"
        in_names = inp.split()
        out_names = m.group(1).split()
        assert sorted(in_names) == sorted(out_names)
        perm = [0, 1] + [2 + in_names.index(n) for n in out_names]
        x = jnp.transpose(occupations, perm)
        s, b = x.shape[0], x.shape[1]
        return x.reshape(s, b, self.ldims)

    def __call__(self, occupations, *, force_pallas=False):
        occs = self._rearrange(occupations)              # (S, B, L)
        S, B, L = occs.shape
        out_flat = occupation_spin_embedding(
            occs.reshape(S * B, L), self.weight_t,
            compute_dtype=self.compute_dtype, force_pallas=force_pallas)
        return out_flat.reshape(S, B, -1)                # (S, B, E)


# --------------------------------- main -----------------------------------
if __name__ == "__main__":
    key = jax.random.PRNGKey(0)
    k_w, k_x, k_x2, k_w2 = jax.random.split(key, 4)

    # ---- check 1: module at small shapes (weight-resident 1-D-grid path) ----
    seq, batch = 8, 2
    input_token_dims = [4, 4]
    output_token_dims = 32
    einops_pattern = "d1 d2 -> (d1 d2)"

    module = OccupationSpinEmbedding(
        input_token_dims, output_token_dims, einops_pattern, k_w)
    occupations = jax.random.normal(
        k_x, (seq, batch, *input_token_dims), dtype=jnp.float32)

    out = jax.block_until_ready(module(occupations, force_pallas=True))
    assert out.shape == (seq, batch, output_token_dims)

    # reference with identical bf16-rounded operands (f32 accumulate)
    occ_r = occupations.reshape(seq, batch, -1).astype(jnp.bfloat16).astype(jnp.float32)
    w_r = module.occs_to_logits.astype(jnp.bfloat16).astype(jnp.float32)
    ref = jnp.einsum("sbl,el->sbe", occ_r, w_r)
    assert jnp.allclose(out, ref, rtol=1e-3, atol=1e-3), \
        float(jnp.max(jnp.abs(out - ref)))

    # loose sanity check against the exact-f32 PyTorch semantics
    ref32 = jnp.einsum("sbl,el->sbe",
                       occupations.reshape(seq, batch, -1), module.occs_to_logits)
    assert jnp.allclose(out, ref32, rtol=0.1, atol=0.25)

    # ---- check 2: K-tiled + multi-M-block path (ragged L masked in kernel) ----
    M2, L2, E2 = 64, 300, 256
    occ2 = jax.random.normal(k_x2, (M2, L2), dtype=jnp.float32)
    w2_t = jax.random.normal(k_w2, (L2, E2), dtype=jnp.float32).astype(jnp.bfloat16)
    out2 = jax.block_until_ready(
        occupation_spin_embedding(occ2, w2_t, compute_dtype=jnp.bfloat16,
                                  max_l_block=128, force_pallas=True))
    ref2 = jnp.dot(occ2.astype(jnp.bfloat16).astype(jnp.float32),
                   w2_t.astype(jnp.float32))
    assert out2.shape == (M2, E2)
    assert jnp.allclose(out2, ref2, rtol=2e-2, atol=2e-2), \
        float(jnp.max(jnp.abs(out2 - ref2)))

    print("KERNEL_OK")
</pallas_src>

<mosaic_0001>
module attributes {stable_mosaic.version = 11 : i64} {
  func.func @_embed_kernel(%arg0: i32, %arg1: memref<16x16xf32, #tpu.memory_space<vmem>>, %arg2: memref<16x32xbf16, #tpu.memory_space<vmem>>, %arg3: memref<16x32xf32, #tpu.memory_space<vmem>>) attributes {dimension_semantics = [#tpu.dimension_semantics<parallel>], iteration_bounds = array<i64: 1>, scalar_prefetch = 0 : i64, scratch_operands = 0 : i64, tpu.core_type = #tpu.core_type<tc>, window_params = [{transform_indices = @transform_0, window_bounds = array<i64: 16, 16>}, {pipeline_mode = #tpu.pipeline_mode<synchronous>, transform_indices = @transform_1, window_bounds = array<i64: 16, 32>}, {transform_indices = @transform_2, window_bounds = array<i64: 16, 32>}]} {
    %c0 = arith.constant 0 : index
    %c0_0 = arith.constant 0 : index
    %0 = vector.load %arg1[%c0, %c0_0] : memref<16x16xf32, #tpu.memory_space<vmem>>, vector<16x16xf32>
    %1 = arith.truncf %0 : vector<16x16xf32> to vector<16x16xbf16>
    %c0_1 = arith.constant 0 : index
    %c0_2 = arith.constant 0 : index
    %2 = vector.load %arg2[%c0_1, %c0_2] : memref<16x32xbf16, #tpu.memory_space<vmem>>, vector<16x32xbf16>
    %cst = arith.constant dense<0.000000e+00> : vector<16x32xf32>
    %3 = tpu.matmul %1, %2, %cst {dimension_numbers = #tpu.dot_dimension_numbers<[1], [0], [0], [1], [0, 0, 1, 1], [], []>} : vector<16x16xbf16>, vector<16x32xbf16>, vector<16x32xf32> -> vector<16x32xf32>
    %c0_3 = arith.constant 0 : index
    %c0_4 = arith.constant 0 : index
    %4 = vector.load %arg3[%c0_3, %c0_4] : memref<16x32xf32, #tpu.memory_space<vmem>>, vector<16x32xf32>
    tpu.vector_store %arg3[%c0_3, %c0_4], %3 {strides = array<i32>} : memref<16x32xf32, #tpu.memory_space<vmem>>, vector<16x32xf32>,
    return
  }
  func.func @transform_0(%arg0: i32) -> (i32, i32) {
    %c0_i32 = arith.constant 0 : i32
    %c0_i32_0 = arith.constant 0 : i32
    return %arg0, %c0_i32 : i32, i32
  }
  func.func @transform_1(%arg0: i32) -> (i32, i32) {
    %c0_i32 = arith.constant 0 : i32
    %c0_i32_0 = arith.constant 0 : i32
    %c0_i32_1 = arith.constant 0 : i32
    return %c0_i32, %c0_i32_0 : i32, i32
  }
  func.func @transform_2(%arg0: i32) -> (i32, i32) {
    %c0_i32 = arith.constant 0 : i32
    %c0_i32_0 = arith.constant 0 : i32
    return %arg0, %c0_i32 : i32, i32
  }
}

</mosaic_0001>

<bundles_post_ra>
// kernel: tpu_custom_call.1
= control target key start
LH: loop header
LB: loop body
LE: loop exit
PB: predicated region body
PF: predicated region fallthrough
CT: control target
= control target key end

     0   :  { %7 = vsyncpa [#allocation3], 0  ;;  %s276_s0 = inlined_call_operand.hbm [shape: f32[16,16], index: 0, kind: input, shape index: {}]   ;;  %s277_s1 = inlined_call_operand.hbm [shape: bf16[16,32], index: 1, kind: input, shape index: {}]   ;;  %s278_s2 = inlined_call_operand.hbm [shape: f32[16,32], index: 2, kind: output, shape index: {}]  }
   0x1   :  { %8 = vsyncpa [#allocation6], 0 }
   0x2   :  { %9 = vsyncpa [#allocation4], 0  ;;  %s210_s9 = smov [#allocation2]   ;;  %s138_s13 = scalar_lea.hbm %s276_s0, 256 }
   0x3   :  { %s15_s10 = sshll.u32 %s210_s9, 4  ;;  %p139_p0 = scmp.ne.s32.totalorder %s276_s0, %s138_s13  ;;  %s16_s10 = int_to_ptr.vmem [resolvable:$true] %s15_s10 }
   0x4   :  { %p142_p1 = scmp.lt.u32.totalorder %s138_s13, %s276_s0 }
   0x6   :  { %p144_p2 = pnand %p142_p1, %p139_p0 }
   0x8   :  { %147 = shalt.err (!%p144_p2)
}
   0x9   :  { %s148_s18 = scalar_lea.vmem %s16_s10, 256  ;;  %p153_p4 = scmp.lt.s32.totalorder %s16_s10, %s16_s10 }
   0xa   :  { %p149_p3 = scmp.ne.s32.totalorder %s16_s10, %s148_s18  ;;  %p154_p5 = scmp.lt.s32.totalorder %s148_s18, %s148_s18 }
   0xc   :  { %p155_p6 = por %p154_p5, %p153_p4 }
   0xe   :  { %p156_p7 = pnand %p155_p6, %p149_p3 }
  0x10   :  { %159 = shalt.err (!%p156_p7)
}
  0x11   :  { %s211_s19 = smov 128   ;;  %s212_s20 = smov 8  }
  0x12   :  { %21 = dma.hbm_to_vmem [thread:$0]  %s276_s0, 256, %s16_s10, [#allocation3], %s211_s19, %s211_s19, %s212_s20  }
  0x13   :  { %s213_s23 = smov [#allocation5]   ;;  %s160_s27 = scalar_lea.hbm %s277_s1, 128 }
  0x14   :  { %s27_s24 = sshll.u32 %s213_s23, 4  ;;  %p161_p8 = scmp.ne.s32.totalorder %s277_s1, %s160_s27  ;;  %s28_s24 = int_to_ptr.vmem [resolvable:$true] %s27_s24 }
  0x15   :  { %p164_p9 = scmp.lt.u32.totalorder %s160_s27, %s277_s1 }
  0x17   :  { %p166_p10 = pnand %p164_p9, %p161_p8 }
  0x19   :  { %169 = shalt.err (!%p166_p10)
}
  0x1a   :  { %s170_s4 = scalar_lea.vmem %s28_s24, 128  ;;  %p175_p12 = scmp.lt.s32.totalorder %s28_s24, %s28_s24 }
  0x1b   :  { %p171_p11 = scmp.ne.s32.totalorder %s28_s24, %s170_s4  ;;  %p176_p13 = scmp.lt.s32.totalorder %s170_s4, %s170_s4 }
  0x1d   :  { %p177_p0 = por %p176_p13, %p175_p12 }
  0x1f   :  { %p178_p1 = pnand %p177_p0, %p171_p11 }
  0x21   :  { %181 = shalt.err (!%p178_p1)
}
  0x22   :  { %s214_s0 = smov 64   ;;  %s215_s5 = smov 4  }
  0x23   :  { %33 = dma.hbm_to_vmem [thread:$0]  %s277_s1, 128, %s28_s24, [#allocation6], %s214_s0, %s214_s0, %s215_s5  }
  0x24   :  { %204 = dma.done.wait [#allocation3], 256  }
  0x25   :  { %205 = vsyncadd [#allocation3], 4294967040 }
  0x26   :  { %206 = dma.done.wait [#allocation6], 128  }
  0x27   :  { %207 = vsyncadd [#allocation6], 4294967168  ;;  %v216_v0 = vmov 0.0   ;;  %vm217_vm0 = vmmov 0   ;;  %v137_v1 = vld [vmem:[#allocation5] sm:$0xff]   ;;  %v41_v2 = vld [vmem:[#allocation2] sm:$0xff] }
  0x28   :  { %122 = vmatprep.subr.bf16.mxu0 %v216_v0  ;;  %124 = vmatprep.mubr.msk.bf16.mxu0 %vm217_vm0, %v216_v0  ;;  %v42_v3 = vld [vmem:[#allocation2 + $0x8] sm:$0xff]  ;;  %vm52_vm1 = vcmask 130048   ;;  %vm97_vm2 = vcmask 261120   ;;  %s218_s8 = smov [#allocation7]  }
  0x29   :  { %123 = vmatpush3.bf16.msra.mxu0 %v137_v1  ;;  %v43_v4 = vpack.c.bf16 %v42_v3, %v41_v2  ;;  %s105_s9 = sshll.u32 %s218_s8, 4  ;;  %s106_s9 = int_to_ptr.vmem [resolvable:$true] %s105_s9 }
  0x2a   :  { %s182_s1 = scalar_lea.vmem %s106_s9, 256  ;;  %p187_p3 = scmp.lt.s32.totalorder %s106_s9, %s106_s9 }
  0x2b   :  { %p183_p2 = scmp.ne.s32.totalorder %s106_s9, %s182_s1  ;;  %p188_p4 = scmp.lt.s32.totalorder %s182_s1, %s182_s1 }
  0x2c   :  { %125 = vmatmul.mubr.msk.bf16.vlgmr.msra.gmra.mrb[0].mxu0 %vm52_vm1, %v43_v4 }
  0x2d   :  { %p189_p5 = por %p188_p4, %p187_p3 }
  0x2f   :  { %p190_p6 = pnand %p189_p5, %p183_p2 }
  0xff   :  { %v90_v5 = vpop.f32.mrb[0].mxu0 }
 0x100   :  { %98 = vst.msk [vmem:[#allocation7] sm:$0xff] %vm97_vm2, %v90_v5  ;;  %v126_v6 = vpop.f32.mrb[1].mxu0 }
 0x101   :  { %v93_v7 = vpop.f32.mrb[2].mxu0 }
 0x102   :  { %99 = vst.msk [vmem:[#allocation7 + $0x8] sm:$0xff] %vm97_vm2, %v93_v7  ;;  %v127_v8 = vpop.f32.mrb[3].mxu0 }
 0x103   :  { %193 = shalt.err (!%p190_p6)
}
 0x104   :  { %s194_s12 = scalar_lea.hbm %s278_s2, 256 }
 0x105   :  { %p195_p7 = scmp.ne.s32.totalorder %s278_s2, %s194_s12  ;;  %p198_p8 = scmp.lt.u32.totalorder %s194_s12, %s278_s2 }
 0x107   :  { %p200_p9 = pnand %p198_p8, %p195_p7 }
 0x109   :  { %203 = shalt.err (!%p200_p9)
}
 0x10a   :  { %111 = dma.vmem_to_hbm [thread:$0]  %s106_s9, 256, %s278_s2, [#allocation4], %s211_s19, %s211_s19, %s212_s20  }
 0x10b   :  { %208 = dma.done.wait [#allocation4], 256  }
 0x10c   :  { %209 = vsyncadd [#allocation4], 4294967040 }
 0x10d   :  { %115 = vsyncpa [#allocation3], 1 }
 0x10e   :  { %116 = vsyncpa [#allocation6], 1 }
 0x10f   :  { %117 = vsyncpa [#allocation4], 1 }

</bundles_post_ra>
